<compile_context>
chip_gen: v7x
topology: tpu7x:2x2x1
jax: 0.10.0
libtpu: 0.0.40
codegen_flags: <defaults>
</compile_context>

<pallas_src>
import jax
import jax.numpy as jnp
from jax.experimental import pallas as pl
from jax.experimental.pallas import tpu as pltpu


def _question_rnn_kernel(e_ref, wh_ref, we_ref, b_ref, out_ref):
    # e_ref   : VMEM (T, Hp)  f32 -- gathered (and zero-padded) word embeddings
    # wh_ref  : VMEM (Hp, Hp) f32 -- W[:, :H].T zero-padded (acts on prev hidden)
    # we_ref  : VMEM (Hp, Hp) f32 -- W[:, H:].T zero-padded (acts on embeddings)
    # b_ref   : VMEM (1, Hp)  f32 -- bias zero-padded
    # out_ref : VMEM (1, Hp)  f32 -- final hidden state (padded)
    T = e_ref.shape[0]
    Hp = out_ref.shape[1]

    # Loop-invariant hoist: load the recurrent weight tile once.
    wh = wh_ref[...]

    # Batched input-path precompute: one (T, Hp) x (Hp, Hp) MXU matmul + bias
    # instead of T tiny matmuls / gathers / bias loads inside the serial loop.
    p = jnp.dot(e_ref[...], we_ref[...],
                preferred_element_type=jnp.float32) + b_ref[...]

    # Serial recurrence, fully unrolled (T is a static trace-time constant):
    # per step a single (1, Hp) x (Hp, Hp) matmul + EUP tanh.
    h = jnp.zeros((1, Hp), dtype=jnp.float32)
    for t in range(T):
        h = jnp.tanh(
            jnp.dot(h, wh, preferred_element_type=jnp.float32) + p[t:t + 1, :])

    out_ref[...] = h


def question_rnn_forward(word_indices, embedding, weight, bias):
    """word_indices: (T,) int32; embedding: (V, H); weight: (H, 2H); bias: (H,)."""
    V, H = embedding.shape
    T = word_indices.shape[0]

    # Lane-dense padding of the hidden dimension (multiple of 128).
    Hp = max(128, ((H + 127) // 128) * 128)
    pad = Hp - H

    # Gather + clamp in the wrapper (no full vocab table inside the kernel).
    idx = jnp.clip(word_indices.astype(jnp.int32), 0, V - 1)
    e = jnp.take(embedding.astype(jnp.float32), idx, axis=0)        # (T, H)

    wh_t = jnp.transpose(weight[:, :H]).astype(jnp.float32)         # (H, H)
    we_t = jnp.transpose(weight[:, H:]).astype(jnp.float32)         # (H, H)

    e_p = jnp.pad(e, ((0, 0), (0, pad)))
    wh_p = jnp.pad(wh_t, ((0, pad), (0, pad)))
    we_p = jnp.pad(we_t, ((0, pad), (0, pad)))
    b_p = jnp.pad(bias.astype(jnp.float32).reshape(1, H), ((0, 0), (0, pad)))

    out = pl.pallas_call(
        _question_rnn_kernel,
        out_shape=jax.ShapeDtypeStruct((1, Hp), jnp.float32),
        grid_spec=pl.GridSpec(
            grid=(1,),
            in_specs=[
                pl.BlockSpec((T, Hp), lambda i: (0, 0)),    # gathered embeddings
                pl.BlockSpec((Hp, Hp), lambda i: (0, 0)),   # Wh^T (padded)
                pl.BlockSpec((Hp, Hp), lambda i: (0, 0)),   # We^T (padded)
                pl.BlockSpec((1, Hp), lambda i: (0, 0)),    # bias (padded)
            ],
            out_specs=pl.BlockSpec((1, Hp), lambda i: (0, 0)),
        ),
        compiler_params=pltpu.CompilerParams(
            dimension_semantics=("arbitrary",)),
    )(e_p, wh_p, we_p, b_p)

    return out[0, :H]                                       # (H,) matches PyTorch


def _reference_forward(word_indices, embedding, weight, bias):
    H = weight.shape[0]
    h = jnp.zeros((H,), jnp.float32)
    for t in range(word_indices.shape[0]):
        e = embedding[word_indices[t]]
        h = jnp.tanh(weight @ jnp.concatenate([h, e]) + bias)
    return h


if __name__ == "__main__":
    hidden_dim = 32
    vocab_size = 64
    seq_len = 8

    key = jax.random.PRNGKey(0)
    k_emb, k_w, k_b, k_idx = jax.random.split(key, 4)

    # Deterministic synthetic parameters (shapes match nn.Embedding / nn.Linear).
    embedding = jax.random.normal(k_emb, (vocab_size, hidden_dim), jnp.float32)
    weight = jax.random.normal(k_w, (hidden_dim, 2 * hidden_dim), jnp.float32) * 0.1
    bias = jax.random.normal(k_b, (hidden_dim,), jnp.float32) * 0.1

    word_indices = jax.random.randint(k_idx, (seq_len,), 0, vocab_size, jnp.int32)

    out = question_rnn_forward(word_indices, embedding, weight, bias)
    out = jax.block_until_ready(out)

    ref = _reference_forward(word_indices, embedding, weight, bias)
    assert out.shape == (hidden_dim,)
    assert jnp.allclose(out, ref, atol=1e-5, rtol=1e-5)

    # TODO(synk): PyTorch module also appends every intermediate hidden state to
    # a Python list (self.hidden_states); only the returned final state is produced.

    print("KERNEL_OK")
</pallas_src>

<mosaic_0001>
module attributes {stable_mosaic.version = 11 : i64} {
  func.func @_question_rnn_kernel(%arg0: i32, %arg1: memref<8x128xf32, #tpu.memory_space<vmem>>, %arg2: memref<128x128xf32, #tpu.memory_space<vmem>>, %arg3: memref<128x128xf32, #tpu.memory_space<vmem>>, %arg4: memref<1x128xf32, #tpu.memory_space<vmem>>, %arg5: memref<1x128xf32, #tpu.memory_space<vmem>>) attributes {dimension_semantics = [#tpu.dimension_semantics<arbitrary>], iteration_bounds = array<i64: 1>, scalar_prefetch = 0 : i64, scratch_operands = 0 : i64, tpu.core_type = #tpu.core_type<tc>, window_params = [{pipeline_mode = #tpu.pipeline_mode<synchronous>, transform_indices = @transform_0, window_bounds = array<i64: 8, 128>}, {pipeline_mode = #tpu.pipeline_mode<synchronous>, transform_indices = @transform_1, window_bounds = array<i64: 128, 128>}, {pipeline_mode = #tpu.pipeline_mode<synchronous>, transform_indices = @transform_2, window_bounds = array<i64: 128, 128>}, {pipeline_mode = #tpu.pipeline_mode<synchronous>, transform_indices = @transform_3, window_bounds = array<i64: 1, 128>}, {pipeline_mode = #tpu.pipeline_mode<synchronous>, transform_indices = @transform_4, window_bounds = array<i64: 1, 128>}]} {
    %c0 = arith.constant 0 : index
    %c0_0 = arith.constant 0 : index
    %0 = vector.load %arg2[%c0, %c0_0] : memref<128x128xf32, #tpu.memory_space<vmem>>, vector<128x128xf32>
    %c0_1 = arith.constant 0 : index
    %c0_2 = arith.constant 0 : index
    %1 = vector.load %arg1[%c0_1, %c0_2] : memref<8x128xf32, #tpu.memory_space<vmem>>, vector<8x128xf32>
    %c0_3 = arith.constant 0 : index
    %c0_4 = arith.constant 0 : index
    %2 = vector.load %arg3[%c0_3, %c0_4] : memref<128x128xf32, #tpu.memory_space<vmem>>, vector<128x128xf32>
    %cst = arith.constant dense<0.000000e+00> : vector<8x128xf32>
    %3 = tpu.matmul %1, %2, %cst {dimension_numbers = #tpu.dot_dimension_numbers<[1], [0], [0], [1], [0, 0, 1, 1], [], []>} : vector<8x128xf32>, vector<128x128xf32>, vector<8x128xf32> -> vector<8x128xf32>
    %c0_5 = arith.constant 0 : index
    %c0_6 = arith.constant 0 : index
    %4 = vector.load %arg4[%c0_5, %c0_6] : memref<1x128xf32, #tpu.memory_space<vmem>>, vector<1x128xf32>
    %5 = vector.broadcast %4 : vector<1x128xf32> to vector<8x128xf32>
    %6 = arith.addf %3, %5 : vector<8x128xf32>
    %cst_7 = arith.constant 0.000000e+00 : f32
    %7 = vector.broadcast %cst_7 : f32 to vector<1x128xf32>
    %cst_8 = arith.constant dense<0.000000e+00> : vector<1x128xf32>
    %8 = tpu.matmul %7, %0, %cst_8 {dimension_numbers = #tpu.dot_dimension_numbers<[1], [0], [0], [1], [0, 0, 1, 1], [], []>} : vector<1x128xf32>, vector<128x128xf32>, vector<1x128xf32> -> vector<1x128xf32>
    %9 = vector.extract_strided_slice %6 {offsets = [0, 0], sizes = [1, 128], strides = [1, 1]} : vector<8x128xf32> to vector<1x128xf32>
    %10 = arith.addf %8, %9 : vector<1x128xf32>
    %11 = math.tanh %10 : vector<1x128xf32>
    %cst_9 = arith.constant dense<0.000000e+00> : vector<1x128xf32>
    %12 = tpu.matmul %11, %0, %cst_9 {dimension_numbers = #tpu.dot_dimension_numbers<[1], [0], [0], [1], [0, 0, 1, 1], [], []>} : vector<1x128xf32>, vector<128x128xf32>, vector<1x128xf32> -> vector<1x128xf32>
    %13 = vector.extract_strided_slice %6 {offsets = [1, 0], sizes = [1, 128], strides = [1, 1]} : vector<8x128xf32> to vector<1x128xf32>
    %14 = arith.addf %12, %13 : vector<1x128xf32>
    %15 = math.tanh %14 : vector<1x128xf32>
    %cst_10 = arith.constant dense<0.000000e+00> : vector<1x128xf32>
    %16 = tpu.matmul %15, %0, %cst_10 {dimension_numbers = #tpu.dot_dimension_numbers<[1], [0], [0], [1], [0, 0, 1, 1], [], []>} : vector<1x128xf32>, vector<128x128xf32>, vector<1x128xf32> -> vector<1x128xf32>
    %17 = vector.extract_strided_slice %6 {offsets = [2, 0], sizes = [1, 128], strides = [1, 1]} : vector<8x128xf32> to vector<1x128xf32>
    %18 = arith.addf %16, %17 : vector<1x128xf32>
    %19 = math.tanh %18 : vector<1x128xf32>
    %cst_11 = arith.constant dense<0.000000e+00> : vector<1x128xf32>
    %20 = tpu.matmul %19, %0, %cst_11 {dimension_numbers = #tpu.dot_dimension_numbers<[1], [0], [0], [1], [0, 0, 1, 1], [], []>} : vector<1x128xf32>, vector<128x128xf32>, vector<1x128xf32> -> vector<1x128xf32>
    %21 = vector.extract_strided_slice %6 {offsets = [3, 0], sizes = [1, 128], strides = [1, 1]} : vector<8x128xf32> to vector<1x128xf32>
    %22 = arith.addf %20, %21 : vector<1x128xf32>
    %23 = math.tanh %22 : vector<1x128xf32>
    %cst_12 = arith.constant dense<0.000000e+00> : vector<1x128xf32>
    %24 = tpu.matmul %23, %0, %cst_12 {dimension_numbers = #tpu.dot_dimension_numbers<[1], [0], [0], [1], [0, 0, 1, 1], [], []>} : vector<1x128xf32>, vector<128x128xf32>, vector<1x128xf32> -> vector<1x128xf32>
    %25 = vector.extract_strided_slice %6 {offsets = [4, 0], sizes = [1, 128], strides = [1, 1]} : vector<8x128xf32> to vector<1x128xf32>
    %26 = arith.addf %24, %25 : vector<1x128xf32>
    %27 = math.tanh %26 : vector<1x128xf32>
    %cst_13 = arith.constant dense<0.000000e+00> : vector<1x128xf32>
    %28 = tpu.matmul %27, %0, %cst_13 {dimension_numbers = #tpu.dot_dimension_numbers<[1], [0], [0], [1], [0, 0, 1, 1], [], []>} : vector<1x128xf32>, vector<128x128xf32>, vector<1x128xf32> -> vector<1x128xf32>
    %29 = vector.extract_strided_slice %6 {offsets = [5, 0], sizes = [1, 128], strides = [1, 1]} : vector<8x128xf32> to vector<1x128xf32>
    %30 = arith.addf %28, %29 : vector<1x128xf32>
    %31 = math.tanh %30 : vector<1x128xf32>
    %cst_14 = arith.constant dense<0.000000e+00> : vector<1x128xf32>
    %32 = tpu.matmul %31, %0, %cst_14 {dimension_numbers = #tpu.dot_dimension_numbers<[1], [0], [0], [1], [0, 0, 1, 1], [], []>} : vector<1x128xf32>, vector<128x128xf32>, vector<1x128xf32> -> vector<1x128xf32>
    %33 = vector.extract_strided_slice %6 {offsets = [6, 0], sizes = [1, 128], strides = [1, 1]} : vector<8x128xf32> to vector<1x128xf32>
    %34 = arith.addf %32, %33 : vector<1x128xf32>
    %35 = math.tanh %34 : vector<1x128xf32>
    %cst_15 = arith.constant dense<0.000000e+00> : vector<1x128xf32>
    %36 = tpu.matmul %35, %0, %cst_15 {dimension_numbers = #tpu.dot_dimension_numbers<[1], [0], [0], [1], [0, 0, 1, 1], [], []>} : vector<1x128xf32>, vector<128x128xf32>, vector<1x128xf32> -> vector<1x128xf32>
    %37 = vector.extract_strided_slice %6 {offsets = [7, 0], sizes = [1, 128], strides = [1, 1]} : vector<8x128xf32> to vector<1x128xf32>
    %38 = arith.addf %36, %37 : vector<1x128xf32>
    %39 = math.tanh %38 : vector<1x128xf32>
    %c0_16 = arith.constant 0 : index
    %c0_17 = arith.constant 0 : index
    %40 = vector.load %arg5[%c0_16, %c0_17] : memref<1x128xf32, #tpu.memory_space<vmem>>, vector<1x128xf32>
    tpu.vector_store %arg5[%c0_16, %c0_17], %39 {strides = array<i32>} : memref<1x128xf32, #tpu.memory_space<vmem>>, vector<1x128xf32>,
    return
  }
  func.func @transform_0(%arg0: i32) -> (i32, i32) {
    %c0_i32 = arith.constant 0 : i32
    %c0_i32_0 = arith.constant 0 : i32
    %c0_i32_1 = arith.constant 0 : i32
    return %c0_i32, %c0_i32_0 : i32, i32
  }
  func.func @transform_1(%arg0: i32) -> (i32, i32) {
    %c0_i32 = arith.constant 0 : i32
    %c0_i32_0 = arith.constant 0 : i32
    %c0_i32_1 = arith.constant 0 : i32
    return %c0_i32, %c0_i32_0 : i32, i32
  }
  func.func @transform_2(%arg0: i32) -> (i32, i32) {
    %c0_i32 = arith.constant 0 : i32
    %c0_i32_0 = arith.constant 0 : i32
    %c0_i32_1 = arith.constant 0 : i32
    return %c0_i32, %c0_i32_0 : i32, i32
  }
  func.func @transform_3(%arg0: i32) -> (i32, i32) {
    %c0_i32 = arith.constant 0 : i32
    %c0_i32_0 = arith.constant 0 : i32
    %c0_i32_1 = arith.constant 0 : i32
    return %c0_i32, %c0_i32_0 : i32, i32
  }
  func.func @transform_4(%arg0: i32) -> (i32, i32) {
    %c0_i32 = arith.constant 0 : i32
    %c0_i32_0 = arith.constant 0 : i32
    %c0_i32_1 = arith.constant 0 : i32
    return %c0_i32, %c0_i32_0 : i32, i32
  }
}

</mosaic_0001>

<bundles_post_ra>
// kernel: tpu_custom_call.1
= control target key start
LH: loop header
LB: loop body
LE: loop exit
PB: predicated region body
PF: predicated region fallthrough
CT: control target
= control target key end

     0   :  { %9 = vsyncpa [#allocation3], 0  ;;  %s1843_s0 = inlined_call_operand.hbm [shape: f32[8,128], index: 0, kind: input, shape index: {}]   ;;  %s1844_s1 = inlined_call_operand.hbm [shape: f32[128,128], index: 1, kind: input, shape index: {}]   ;;  %s1845_s2 = inlined_call_operand.hbm [shape: f32[128,128], index: 2, kind: input, shape index: {}]   ;;  %s1846_s3 = inlined_call_operand.vmem [shape: f32[1,128], index: 3, kind: input, shape index: {}]   ;;  %s1847_s4 = inlined_call_operand.hbm [shape: f32[1,128], index: 4, kind: output, shape index: {}]  }
   0x1   :  { %10 = vsyncpa [#allocation6], 0 }
   0x2   :  { %11 = vsyncpa [#allocation4], 0  ;;  %s1571_s15 = smov [#allocation5]   ;;  %s1477_s19 = scalar_lea.hbm %s1844_s1, 2048 }
   0x3   :  { %s27_s16 = sshll.u32 %s1571_s15, 4  ;;  %p1478_p0 = scmp.ne.s32.totalorder %s1844_s1, %s1477_s19  ;;  %s28_s16 = int_to_ptr.vmem [resolvable:$true] %s27_s16 }
   0x4   :  { %p1481_p1 = scmp.lt.u32.totalorder %s1477_s19, %s1844_s1 }
   0x6   :  { %p1483_p2 = pnand %p1481_p1, %p1478_p0 }
   0x8   :  { %1486 = shalt.err (!%p1483_p2)
}
   0x9   :  { %s1487_s24 = scalar_lea.vmem %s28_s16, 2048  ;;  %p1492_p4 = scmp.lt.s32.totalorder %s28_s16, %s28_s16 }
   0xa   :  { %p1488_p3 = scmp.ne.s32.totalorder %s28_s16, %s1487_s24  ;;  %p1493_p5 = scmp.lt.s32.totalorder %s1487_s24, %s1487_s24 }
   0xc   :  { %p1494_p6 = por %p1493_p5, %p1492_p4 }
   0xe   :  { %p1495_p7 = pnand %p1494_p6, %p1488_p3 }
  0x10   :  { %1498 = shalt.err (!%p1495_p7)
}
  0x11   :  { %s1572_s25 = smov 128   ;;  %s1573_s26 = smov 8  }
  0x12   :  { %33 = dma.hbm_to_vmem [thread:$0]  %s1844_s1, 2048, %s28_s16, [#allocation6], %s1572_s25, %s1572_s25, %s1573_s26  }
  0x13   :  { %s1574_s29 = smov [#allocation2]   ;;  %s1575_s5 = smov [#allocation7]  }
  0x14   :  { %s18_s30 = sshll.u32 %s1574_s29, 4  ;;  %s39_s6 = sshll.u32 %s1575_s5, 4  ;;  %s19_s30 = int_to_ptr.vmem [resolvable:$true] %s18_s30  ;;  %s40_s6 = int_to_ptr.vmem [resolvable:$true] %s39_s6 }
  0x15   :  { %s1499_s9 = scalar_lea.hbm %s1843_s0, 128 }
  0x16   :  { %p1500_p8 = scmp.ne.s32.totalorder %s1843_s0, %s1499_s9  ;;  %p1503_p9 = scmp.lt.u32.totalorder %s1499_s9, %s1843_s0 }
  0x18   :  { %p1505_p10 = pnand %p1503_p9, %p1500_p8 }
  0x1a   :  { %1508 = shalt.err (!%p1505_p10)
}
  0x1b   :  { %s1509_s1 = scalar_lea.vmem %s19_s30, 128  ;;  %p1514_p12 = scmp.lt.s32.totalorder %s19_s30, %s19_s30 }
  0x1c   :  { %p1510_p11 = scmp.ne.s32.totalorder %s19_s30, %s1509_s1  ;;  %p1515_p13 = scmp.lt.s32.totalorder %s1509_s1, %s1509_s1 }
  0x1e   :  { %p1516_p0 = por %p1515_p13, %p1514_p12 }
  0x20   :  { %p1517_p1 = pnand %p1516_p0, %p1510_p11 }
  0x22   :  { %1520 = shalt.err (!%p1517_p1)
}
  0x23   :  { %21 = dma.hbm_to_vmem [thread:$0]  %s1843_s0, 128, %s19_s30, [#allocation3]  }
  0x24   :  { %s1521_s18 = scalar_lea.hbm %s1845_s2, 2048 }
  0x25   :  { %p1522_p2 = scmp.ne.s32.totalorder %s1845_s2, %s1521_s18  ;;  %p1525_p3 = scmp.lt.u32.totalorder %s1521_s18, %s1845_s2 }
  0x27   :  { %p1527_p4 = pnand %p1525_p3, %p1522_p2 }
  0x29   :  { %1530 = shalt.err (!%p1527_p4)
}
  0x2a   :  { %s1531_s23 = scalar_lea.vmem %s40_s6, 2048  ;;  %p1536_p6 = scmp.lt.s32.totalorder %s40_s6, %s40_s6 }
  0x2b   :  { %p1532_p5 = scmp.ne.s32.totalorder %s40_s6, %s1531_s23  ;;  %p1537_p7 = scmp.lt.s32.totalorder %s1531_s23, %s1531_s23 }
  0x2d   :  { %p1538_p8 = por %p1537_p7, %p1536_p6 }
  0x2f   :  { %p1539_p9 = pnand %p1538_p8, %p1532_p5 }
  0x31   :  { %1542 = shalt.err (!%p1539_p9)
}
  0x32   :  { %45 = dma.hbm_to_vmem [thread:$0]  %s1845_s2, 2048, %s40_s6, [#allocation6], %s1572_s25, %s1572_s25, %s1573_s26  }
  0x33   :  { %1565 = dma.done.wait [#allocation3], 128  }
  0x34   :  { %1566 = vsyncadd [#allocation3], 4294967168 }
  0x35   :  { %1567 = dma.done.wait [#allocation6], 4096  }
  0x36   :  { %1568 = vsyncadd [#allocation6], 4294963200  ;;  %v1576_v0 = vmov 0.0|0.0   ;;  %vm1577_vm0 = vmmov 0   ;;  %v1578_v1 = vmov 0.0   ;;  %v74_v2 = vld [vmem:[#allocation7] sm:$0xff] }
  0x37   :  { %1236 = vmatprep.subr.bf16.mxu0 %v1576_v0  ;;  %1260 = vmatprep.subr.bf16.mxu1 %v1576_v0  ;;  %v75_v3 = vld [vmem:[#allocation7 + $0x8] sm:$0xff]  ;;  %v57_v4 = vld [vmem:[#allocation5] sm:$0xff]  ;;  %v76_v7 = vld [vmem:[#allocation7 + $0x10] sm:$0xff] }
  0x38   :  { %953 = vmatprep.mubr.msk.f32.mxu0 %vm1577_vm0, %v1578_v1  ;;  %988 = vmatprep.mubr.msk.f32.mxu1 %vm1577_vm0, %v1578_v1  ;;  %v1237_v5 = vpack.c.bf16 %v75_v3, %v74_v2  ;;  %v58_v6 = vld [vmem:[#allocation5 + $0x8] sm:$0xff]  ;;  %v77_v8 = vld [vmem:[#allocation7 + $0x18] sm:$0xff]  ;;  %v59_v10 = vld [vmem:[#allocation5 + $0x10] sm:$0xff] }
  0x39   :  { %v1653_v9 = vpack.c.bf16 %v58_v6, %v57_v4  ;;  %v60_v11 = vld [vmem:[#allocation5 + $0x18] sm:$0xff]  ;;  %v1240_v12 = vpack.c.bf16 %v77_v8, %v76_v7  ;;  %v78_v14 = vld [vmem:[#allocation7 + $0x20] sm:$0xff]  ;;  %v79_v15 = vld [vmem:[#allocation7 + $0x28] sm:$0xff] }
  0x3a   :  { %1238 = vmatpush3.bf16.msra.mxu0 %v1237_v5  ;;  %v1657_v13 = vpack.c.bf16 %v60_v11, %v59_v10  ;;  %v61_v16 = vld [vmem:[#allocation5 + $0x20] sm:$0xff]  ;;  %v62_v17 = vld [vmem:[#allocation5 + $0x28] sm:$0xff]  ;;  %v1243_v18 = vpack.c.bf16 %v79_v15, %v78_v14  ;;  %v80_v20 = vld [vmem:[#allocation7 + $0x30] sm:$0xff] }
  0x3b   :  { %1262 = vmatpush3.bf16.msra.mxu1 %v1653_v9  ;;  %1239 = vmatprep.subr.bf16.mxu0 %v1576_v0  ;;  %v1662_v19 = vpack.c.bf16 %v62_v17, %v61_v16  ;;  %v81_v21 = vld [vmem:[#allocation7 + $0x38] sm:$0xff]  ;;  %v63_v22 = vld [vmem:[#allocation5 + $0x30] sm:$0xff]  ;;  %v82_v26 = vld [vmem:[#allocation7 + $0x40] sm:$0xff] }
  0x3c   :  { %1263 = vmatprep.subr.bf16.mxu1 %v1576_v0  ;;  %v64_v23 = vld [vmem:[#allocation5 + $0x38] sm:$0xff]  ;;  %v1246_v24 = vpack.c.bf16 %v81_v21, %v80_v20  ;;  %v83_v27 = vld [vmem:[#allocation7 + $0x48] sm:$0xff]  ;;  %v65_v28 = vld [vmem:[#allocation5 + $0x40] sm:$0xff] }
  0x3d   :  { %v1667_v25 = vpack.c.bf16 %v64_v23, %v63_v22  ;;  %v66_v29 = vld [vmem:[#allocation5 + $0x48] sm:$0xff]  ;;  %v1249_v30 = vpack.c.bf16 %v83_v27, %v82_v26  ;;  %v84_v32 = vld [vmem:[#allocation7 + $0x50] sm:$0xff]  ;;  %v85_v33 = vld [vmem:[#allocation7 + $0x58] sm:$0xff] }
  0x3e   :  { %1241 = vmatpush3.bf16.msra.mxu0 %v1240_v12  ;;  %v1672_v31 = vpack.c.bf16 %v66_v29, %v65_v28  ;;  %v67_v34 = vld [vmem:[#allocation5 + $0x50] sm:$0xff]  ;;  %v68_v35 = vld [vmem:[#allocation5 + $0x58] sm:$0xff]  ;;  %v1252_v36 = vpack.c.bf16 %v85_v33, %v84_v32  ;;  %v86_v38 = vld [vmem:[#allocation7 + $0x60] sm:$0xff] }
  0x3f   :  { %1265 = vmatpush3.bf16.msra.mxu1 %v1657_v13  ;;  %1242 = vmatprep.subr.bf16.mxu0 %v1576_v0  ;;  %v1677_v37 = vpack.c.bf16 %v68_v35, %v67_v34  ;;  %v87_v39 = vld [vmem:[#allocation7 + $0x68] sm:$0xff]  ;;  %v69_v40 = vld [vmem:[#allocation5 + $0x60] sm:$0xff]  ;;  %v88_v44 = vld [vmem:[#allocation7 + $0x70] sm:$0xff] }
  0x40   :  { %1266 = vmatprep.subr.bf16.mxu1 %v1576_v0  ;;  %v70_v41 = vld [vmem:[#allocation5 + $0x68] sm:$0xff]  ;;  %v1255_v42 = vpack.c.bf16 %v87_v39, %v86_v38  ;;  %v89_v45 = vld [vmem:[#allocation7 + $0x78] sm:$0xff]  ;;  %v71_v46 = vld [vmem:[#allocation5 + $0x70] sm:$0xff] }
  0x41   :  { %v1682_v43 = vpack.c.bf16 %v70_v41, %v69_v40  ;;  %v72_v47 = vld [vmem:[#allocation5 + $0x78] sm:$0xff]  ;;  %v1258_v48 = vpack.c.bf16 %v89_v45, %v88_v44 }
  0x42   :  { %1244 = vmatpush3.bf16.msra.mxu0 %v1243_v18  ;;  %v1687_v49 = vpack.c.bf16 %v72_v47, %v71_v46  ;;  %v73_v50 = vld [vmem:[#allocation2] sm:$0xff] }
  0x43   :  { %1268 = vmatpush3.bf16.msra.mxu1 %v1662_v19  ;;  %1245 = vmatprep.subr.bf16.mxu0 %v1576_v0  ;;  %v767_v51 = vld [vmem:[%s1846_s3] ss:$0 sm:$0xff]  ;;  %s1579_s3 = smov [#allocation8]  }
  0x44   :  { %1269 = vmatprep.subr.bf16.mxu1 %v1576_v0  ;;  %s757_s26 = sshll.u32 %s1579_s3, 4  ;;  %s758_s26 = int_to_ptr.vmem [resolvable:$true] %s757_s26 }
  0x45   :  { %s1543_s27 = scalar_lea.vmem %s758_s26, 16  ;;  %s1547_s28 = scalar_lea.vmem %s758_s26, 32 }
  0x46   :  { %1247 = vmatpush3.bf16.msra.mxu0 %v1246_v24  ;;  %p1544_p10 = scmp.ne.s32.totalorder %s758_s26, %s1543_s27  ;;  %p1548_p11 = scmp.lt.s32.totalorder %s758_s26, %s758_s26 }
  0x47   :  { %1271 = vmatpush3.bf16.msra.mxu1 %v1667_v25  ;;  %1248 = vmatprep.subr.bf16.mxu0 %v1576_v0  ;;  %p1549_p12 = scmp.lt.s32.totalorder %s1547_s28, %s1543_s27 }
  0x48   :  { %1272 = vmatprep.subr.bf16.mxu1 %v1576_v0 }
  0x49   :  { %p1550_p13 = por %p1549_p12, %p1548_p11 }
  0x4a   :  { %1250 = vmatpush3.bf16.msra.mxu0 %v1249_v30 }
  0x4b   :  { %1274 = vmatpush3.bf16.msra.mxu1 %v1672_v31  ;;  %1251 = vmatprep.subr.bf16.mxu0 %v1576_v0  ;;  %p1551_p0 = pnand %p1550_p13, %p1544_p10 }
  0x4c   :  { %1275 = vmatprep.subr.bf16.mxu1 %v1576_v0 }
  0x4e   :  { %1253 = vmatpush3.bf16.msra.mxu0 %v1252_v36 }
  0x4f   :  { %1277 = vmatpush3.bf16.msra.mxu1 %v1677_v37  ;;  %1254 = vmatprep.subr.bf16.mxu0 %v1576_v0 }
  0x50   :  { %1278 = vmatprep.subr.bf16.mxu1 %v1576_v0 }
  0x52   :  { %1256 = vmatpush3.bf16.msra.mxu0 %v1255_v42 }
  0x53   :  { %1280 = vmatpush3.bf16.msra.mxu1 %v1682_v43  ;;  %1257 = vmatprep.subr.bf16.mxu0 %v1576_v0 }
  0x54   :  { %1281 = vmatprep.subr.bf16.mxu1 %v1576_v0 }
  0x56   :  { %1259 = vmatpush3.bf16.msra.mxu0 %v1258_v48 }
  0x57   :  { %1283 = vmatpush3.bf16.msra.mxu1 %v1687_v49  ;;  %1284 = vmatprep.subr.bf16.mxu0 %v1576_v0 }
  0x58   :  { %1308 = vmatprep.subr.bf16.mxu1 %v1576_v0 }
  0x59   :  { %954 = vmatmul.mubr.f32.vlgmr.msra.gmra.mrb[0].mxu0 %v73_v50 }
  0x5a   :  { %989 = vmatmul.mubr.f32.vlgmr.msra.gmra.mrb[0].mxu1 %v1578_v1  ;;  %1286 = vmatpush3.bf16.msra.mxu0 %v1653_v9 }
  0x5b   :  { %1287 = vmatprep.subr.bf16.mxu0 %v1576_v0  ;;  %1023 = vmatprep.mubr.msk.f32.mxu0 %vm1577_vm0, %v1578_v1 }
  0x5c   :  { %1310 = vmatpush3.bf16.msra.mxu1 %v1653_v9  ;;  %1058 = vmatprep.mubr.msk.f32.mxu1 %vm1577_vm0, %v1578_v1 }
  0x5d   :  { %1311 = vmatprep.subr.bf16.mxu1 %v1576_v0 }
  0x5e   :  { %1289 = vmatpush3.bf16.msra.mxu0 %v1657_v13 }
  0x5f   :  { %1290 = vmatprep.subr.bf16.mxu0 %v1576_v0 }
  0x60   :  { %1313 = vmatpush3.bf16.msra.mxu1 %v1657_v13 }
  0x61   :  { %1314 = vmatprep.subr.bf16.mxu1 %v1576_v0 }
  0x62   :  { %1292 = vmatpush3.bf16.msra.mxu0 %v1662_v19 }
  0x63   :  { %1293 = vmatprep.subr.bf16.mxu0 %v1576_v0 }
  0x64   :  { %1316 = vmatpush3.bf16.msra.mxu1 %v1662_v19 }
  0x65   :  { %1317 = vmatprep.subr.bf16.mxu1 %v1576_v0 }
  0x66   :  { %1295 = vmatpush3.bf16.msra.mxu0 %v1667_v25 }
  0x67   :  { %1296 = vmatprep.subr.bf16.mxu0 %v1576_v0 }
  0x68   :  { %1319 = vmatpush3.bf16.msra.mxu1 %v1667_v25 }
  0x69   :  { %1320 = vmatprep.subr.bf16.mxu1 %v1576_v0 }
  0x6a   :  { %1298 = vmatpush3.bf16.msra.mxu0 %v1672_v31 }
  0x6b   :  { %1299 = vmatprep.subr.bf16.mxu0 %v1576_v0 }
  0x6c   :  { %1322 = vmatpush3.bf16.msra.mxu1 %v1672_v31 }
  0x6d   :  { %1323 = vmatprep.subr.bf16.mxu1 %v1576_v0 }
  0x6e   :  { %1301 = vmatpush3.bf16.msra.mxu0 %v1677_v37 }
  0x6f   :  { %1302 = vmatprep.subr.bf16.mxu0 %v1576_v0 }
  0x70   :  { %1325 = vmatpush3.bf16.msra.mxu1 %v1677_v37 }
  0x71   :  { %1326 = vmatprep.subr.bf16.mxu1 %v1576_v0 }
  0x72   :  { %1304 = vmatpush3.bf16.msra.mxu0 %v1682_v43 }
  0x73   :  { %1305 = vmatprep.subr.bf16.mxu0 %v1576_v0 }
  0x74   :  { %1328 = vmatpush3.bf16.msra.mxu1 %v1682_v43 }
  0x75   :  { %1329 = vmatprep.subr.bf16.mxu1 %v1576_v0 }
  0x76   :  { %1307 = vmatpush3.bf16.msra.mxu0 %v1687_v49 }
  0x77   :  { %1332 = vmatprep.subr.bf16.mxu0 %v1576_v0 }
  0x78   :  { %1331 = vmatpush3.bf16.msra.mxu1 %v1687_v49 }
  0x79   :  { %1356 = vmatprep.subr.bf16.mxu1 %v1576_v0 }
 0x12c   :  { %v163_v52 = vpop.f32.mrb[0].mxu0 }
 0x12d   :  { %v1733_v53 = vadd.f32 %v767_v51, %v163_v52  ;;  %v955_v54 = vpop.f32.mrb[1].mxu0  ;;  %v233_v55 = vpop.f32.mrb[0].mxu1 }
 0x12e   :  { %v990_v56 = vpop.f32.mrb[1].mxu1 }
 0x12f   :  { %v234_v57 = vadd.f32 %v233_v55, %v1733_v53  ;;  %v239_v59 = vrot.slane %v1733_v53, 1  ;;  %v312_v2 = vrot.slane %v1733_v53, 2  ;;  %v385_v7 = vrot.slane %v1733_v53, 3 }
 0x130   :  { %v458_v14 = vrot.slane %v1733_v53, 4  ;;  %v604_v21 = vrot.slane %v1733_v53, 6 }
 0x131   :  { %1461 = vtanh.f32 %v234_v57 }
 0x13b   :  { %v1462_v58 = vpop.eup %1461 }
 0x13c   :  { %1024 = vmatmul.mubr.f32.vlgmr.msra.gmra.mrb[2].mxu0 %v1462_v58 }
 0x13d   :  { %1334 = vmatpush3.bf16.msra.mxu0 %v1653_v9  ;;  %1093 = vmatprep.mubr.msk.f32.mxu0 %vm1577_vm0, %v1578_v1 }
 0x13e   :  { %1335 = vmatprep.subr.bf16.mxu0 %v1576_v0 }
 0x141   :  { %1337 = vmatpush3.bf16.msra.mxu0 %v1657_v13 }
 0x142   :  { %1338 = vmatprep.subr.bf16.mxu0 %v1576_v0 }
 0x145   :  { %1340 = vmatpush3.bf16.msra.mxu0 %v1662_v19 }
 0x146   :  { %1341 = vmatprep.subr.bf16.mxu0 %v1576_v0 }
 0x149   :  { %1343 = vmatpush3.bf16.msra.mxu0 %v1667_v25 }
 0x14a   :  { %1344 = vmatprep.subr.bf16.mxu0 %v1576_v0 }
 0x14d   :  { %1346 = vmatpush3.bf16.msra.mxu0 %v1672_v31 }
 0x14e   :  { %1347 = vmatprep.subr.bf16.mxu0 %v1576_v0 }
 0x151   :  { %1349 = vmatpush3.bf16.msra.mxu0 %v1677_v37 }
 0x152   :  { %1350 = vmatprep.subr.bf16.mxu0 %v1576_v0 }
 0x155   :  { %1352 = vmatpush3.bf16.msra.mxu0 %v1682_v43 }
 0x156   :  { %1353 = vmatprep.subr.bf16.mxu0 %v1576_v0 }
 0x159   :  { %1355 = vmatpush3.bf16.msra.mxu0 %v1687_v49 }
 0x15a   :  { %1380 = vmatprep.subr.bf16.mxu0 %v1576_v0 }
 0x20f   :  { %v307_v60 = vpop.f32.mrb[2].mxu0 }
 0x210   :  { %v308_v61 = vadd.f32 %v307_v60, %v239_v59  ;;  %v1025_v62 = vpop.f32.mrb[3].mxu0 }
 0x212   :  { %1463 = vtanh.f32 %v308_v61 }
 0x21c   :  { %v1464_v63 = vpop.eup %1463 }
 0x21d   :  { %1059 = vmatmul.mubr.f32.vlgmr.msra.gmra.mrb[2].mxu1 %v1464_v63 }
 0x21e   :  { %1358 = vmatpush3.bf16.msra.mxu1 %v1653_v9  ;;  %1128 = vmatprep.mubr.msk.f32.mxu1 %vm1577_vm0, %v1578_v1 }
 0x21f   :  { %1359 = vmatprep.subr.bf16.mxu1 %v1576_v0 }
 0x222   :  { %1361 = vmatpush3.bf16.msra.mxu1 %v1657_v13 }
 0x223   :  { %1362 = vmatprep.subr.bf16.mxu1 %v1576_v0 }
 0x226   :  { %1364 = vmatpush3.bf16.msra.mxu1 %v1662_v19 }
 0x227   :  { %1365 = vmatprep.subr.bf16.mxu1 %v1576_v0 }
 0x22a   :  { %1367 = vmatpush3.bf16.msra.mxu1 %v1667_v25 }
 0x22b   :  { %1368 = vmatprep.subr.bf16.mxu1 %v1576_v0 }
 0x22e   :  { %1370 = vmatpush3.bf16.msra.mxu1 %v1672_v31 }
 0x22f   :  { %1371 = vmatprep.subr.bf16.mxu1 %v1576_v0 }
 0x232   :  { %1373 = vmatpush3.bf16.msra.mxu1 %v1677_v37 }
 0x233   :  { %1374 = vmatprep.subr.bf16.mxu1 %v1576_v0 }
 0x236   :  { %1376 = vmatpush3.bf16.msra.mxu1 %v1682_v43 }
 0x237   :  { %1377 = vmatprep.subr.bf16.mxu1 %v1576_v0 }
 0x23a   :  { %1379 = vmatpush3.bf16.msra.mxu1 %v1687_v49 }
 0x23b   :  { %1404 = vmatprep.subr.bf16.mxu1 %v1576_v0 }
 0x2f0   :  { %v380_v3 = vpop.f32.mrb[2].mxu1 }
 0x2f1   :  { %v381_v4 = vadd.f32 %v380_v3, %v312_v2  ;;  %v1060_v5 = vpop.f32.mrb[3].mxu1 }
 0x2f3   :  { %1465 = vtanh.f32 %v381_v4 }
 0x2fd   :  { %v1466_v6 = vpop.eup %1465 }
 0x2fe   :  { %1094 = vmatmul.mubr.f32.vlgmr.msra.gmra.mrb[4].mxu0 %v1466_v6 }
 0x2ff   :  { %1382 = vmatpush3.bf16.msra.mxu0 %v1653_v9  ;;  %1163 = vmatprep.mubr.msk.f32.mxu0 %vm1577_vm0, %v1578_v1 }
 0x300   :  { %1383 = vmatprep.subr.bf16.mxu0 %v1576_v0 }
 0x303   :  { %1385 = vmatpush3.bf16.msra.mxu0 %v1657_v13 }
 0x304   :  { %1386 = vmatprep.subr.bf16.mxu0 %v1576_v0 }
 0x307   :  { %1388 = vmatpush3.bf16.msra.mxu0 %v1662_v19 }
 0x308   :  { %1389 = vmatprep.subr.bf16.mxu0 %v1576_v0 }
 0x30b   :  { %1391 = vmatpush3.bf16.msra.mxu0 %v1667_v25 }
 0x30c   :  { %1392 = vmatprep.subr.bf16.mxu0 %v1576_v0 }
 0x30f   :  { %1394 = vmatpush3.bf16.msra.mxu0 %v1672_v31 }
 0x310   :  { %1395 = vmatprep.subr.bf16.mxu0 %v1576_v0 }
 0x313   :  { %1397 = vmatpush3.bf16.msra.mxu0 %v1677_v37 }
 0x314   :  { %1398 = vmatprep.subr.bf16.mxu0 %v1576_v0 }
 0x317   :  { %1400 = vmatpush3.bf16.msra.mxu0 %v1682_v43 }
 0x318   :  { %1401 = vmatprep.subr.bf16.mxu0 %v1576_v0 }
 0x31b   :  { %1403 = vmatpush3.bf16.msra.mxu0 %v1687_v49 }
 0x31c   :  { %1428 = vmatprep.subr.bf16.mxu0 %v1576_v0 }
 0x3d1   :  { %v453_v8 = vpop.f32.mrb[4].mxu0 }
 0x3d2   :  { %v454_v10 = vadd.f32 %v453_v8, %v385_v7  ;;  %v1095_v11 = vpop.f32.mrb[5].mxu0 }
 0x3d4   :  { %1467 = vtanh.f32 %v454_v10 }
 0x3de   :  { %v1468_v12 = vpop.eup %1467 }
 0x3df   :  { %1129 = vmatmul.mubr.f32.vlgmr.msra.gmra.mrb[4].mxu1 %v1468_v12 }
 0x3e0   :  { %1406 = vmatpush3.bf16.msra.mxu1 %v1653_v9  ;;  %1198 = vmatprep.mubr.msk.f32.mxu1 %vm1577_vm0, %v1578_v1 }
 0x3e1   :  { %1407 = vmatprep.subr.bf16.mxu1 %v1576_v0 }
 0x3e4   :  { %1409 = vmatpush3.bf16.msra.mxu1 %v1657_v13 }
 0x3e5   :  { %1410 = vmatprep.subr.bf16.mxu1 %v1576_v0 }
 0x3e8   :  { %1412 = vmatpush3.bf16.msra.mxu1 %v1662_v19 }
 0x3e9   :  { %1413 = vmatprep.subr.bf16.mxu1 %v1576_v0 }
 0x3ec   :  { %1415 = vmatpush3.bf16.msra.mxu1 %v1667_v25 }
 0x3ed   :  { %1416 = vmatprep.subr.bf16.mxu1 %v1576_v0 }
 0x3f0   :  { %1418 = vmatpush3.bf16.msra.mxu1 %v1672_v31 }
 0x3f1   :  { %1419 = vmatprep.subr.bf16.mxu1 %v1576_v0 }
 0x3f4   :  { %1421 = vmatpush3.bf16.msra.mxu1 %v1677_v37 }
 0x3f5   :  { %1422 = vmatprep.subr.bf16.mxu1 %v1576_v0 }
 0x3f8   :  { %1424 = vmatpush3.bf16.msra.mxu1 %v1682_v43 }
 0x3f9   :  { %1425 = vmatprep.subr.bf16.mxu1 %v1576_v0 }
 0x3fc   :  { %1427 = vmatpush3.bf16.msra.mxu1 %v1687_v49 }
 0x4b2   :  { %v526_v15 = vpop.f32.mrb[4].mxu1 }
 0x4b3   :  { %v527_v16 = vadd.f32 %v526_v15, %v458_v14  ;;  %v1130_v17 = vpop.f32.mrb[5].mxu1 }
 0x4b5   :  { %1469 = vtanh.f32 %v527_v16 }
 0x4bf   :  { %v1470_v18 = vpop.eup %1469 }
 0x4c0   :  { %1164 = vmatmul.mubr.f32.vlgmr.msra.gmra.mrb[6].mxu0 %v1470_v18 }
 0x4c1   :  { %1430 = vmatpush3.bf16.msra.mxu0 %v1653_v9  ;;  %1233 = vmatprep.mubr.msk.f32.mxu0 %vm1577_vm0, %v1578_v1  ;;  %v531_v1 = vrot.slane %v1733_v53, 5 }
 0x4c2   :  { %1431 = vmatprep.subr.bf16.mxu0 %v1576_v0 }
 0x4c5   :  { %1433 = vmatpush3.bf16.msra.mxu0 %v1657_v13 }
 0x4c6   :  { %1434 = vmatprep.subr.bf16.mxu0 %v1576_v0 }
 0x4c9   :  { %1436 = vmatpush3.bf16.msra.mxu0 %v1662_v19 }
 0x4ca   :  { %1437 = vmatprep.subr.bf16.mxu0 %v1576_v0 }
 0x4cd   :  { %1439 = vmatpush3.bf16.msra.mxu0 %v1667_v25 }
 0x4ce   :  { %1440 = vmatprep.subr.bf16.mxu0 %v1576_v0 }
 0x4d1   :  { %1442 = vmatpush3.bf16.msra.mxu0 %v1672_v31 }
 0x4d2   :  { %1443 = vmatprep.subr.bf16.mxu0 %v1576_v0 }
 0x4d5   :  { %1445 = vmatpush3.bf16.msra.mxu0 %v1677_v37 }
 0x4d6   :  { %1446 = vmatprep.subr.bf16.mxu0 %v1576_v0 }
 0x4d9   :  { %1448 = vmatpush3.bf16.msra.mxu0 %v1682_v43 }
 0x4da   :  { %1449 = vmatprep.subr.bf16.mxu0 %v1576_v0  ;;  %v677_v0 = vrot.slane %v1733_v53, 7 }
 0x4dd   :  { %1451 = vmatpush3.bf16.msra.mxu0 %v1687_v49 }
 0x593   :  { %v599_v9 = vpop.f32.mrb[6].mxu0 }
 0x594   :  { %v600_v13 = vadd.f32 %v599_v9, %v531_v1  ;;  %v1165_v19 = vpop.f32.mrb[7].mxu0 }
 0x596   :  { %1471 = vtanh.f32 %v600_v13 }
 0x5a0   :  { %v1472_v20 = vpop.eup %1471 }
 0x5a1   :  { %1199 = vmatmul.mubr.f32.vlgmr.msra.gmra.mrb[6].mxu1 %v1472_v20 }
 0x674   :  { %v672_v22 = vpop.f32.mrb[6].mxu1 }
 0x675   :  { %v673_v23 = vadd.f32 %v672_v22, %v604_v21  ;;  %v1200_v24 = vpop.f32.mrb[7].mxu1 }
 0x677   :  { %1473 = vtanh.f32 %v673_v23 }
 0x681   :  { %v1474_v25 = vpop.eup %1473 }
 0x682   :  { %1234 = vmatmul.mubr.f32.vlgmr.msra.gmra.mrb[8].mxu0 %v1474_v25 }
 0x755   :  { %v745_v26 = vpop.f32.mrb[8].mxu0 }
 0x756   :  { %v746_v27 = vadd.f32 %v745_v26, %v677_v0  ;;  %v1235_v28 = vpop.f32.mrb[9].mxu0 }
 0x758   :  { %1475 = vtanh.f32 %v746_v27 }
 0x762   :  { %v1476_v29 = vpop.eup %1475 }
 0x763   :  { %750 = vst [vmem:[#allocation8] sm:$0x1] %v1476_v29 }
 0x764   :  { %1554 = shalt.err (!%p1551_p0)
}
 0x765   :  { %s1555_s5 = scalar_lea.hbm %s1847_s4, 16 }
 0x766   :  { %p1556_p1 = scmp.ne.s32.totalorder %s1847_s4, %s1555_s5  ;;  %p1559_p2 = scmp.lt.u32.totalorder %s1555_s5, %s1847_s4 }
 0x768   :  { %p1561_p3 = pnand %p1559_p2, %p1556_p1 }
 0x76a   :  { %1564 = shalt.err (!%p1561_p3)
}
 0x76b   :  { %760 = dma.vmem_to_hbm [thread:$0]  %s758_s26, 16, %s1847_s4, [#allocation4]  }
 0x76c   :  { %1569 = dma.done.wait [#allocation4], 16  }
 0x76d   :  { %1570 = vsyncadd [#allocation4], 4294967280 }
 0x76e   :  { %764 = vsyncpa [#allocation3], 1 }
 0x76f   :  { %765 = vsyncpa [#allocation6], 1 }
 0x770   :  { %766 = vsyncpa [#allocation4], 1 }

</bundles_post_ra>
